<compile_context>
chip_gen: v6e
topology: v6e:2x2x1
jax: 0.10.0
libtpu: 0.0.40
codegen_flags: <defaults>
</compile_context>

<pallas_src>
import math

import numpy as np

import jax
import jax.numpy as jnp
from jax.experimental import pallas as pl
from jax.experimental.pallas import tpu as pltpu


# ----------------------------------------------------------------------------
# Small helpers
# ----------------------------------------------------------------------------
def _round_up(x, m):
    return ((x + m - 1) // m) * m


def _pad_geometry(n, tm_target=512, tk_target=2048):
    """Padded node count + (row tile, contraction tile), all multiples of 128."""
    n128 = _round_up(max(n, 1), 128)
    tm = min(tm_target, n128)
    tk = min(tk_target, n128)
    lcm = tm * tk // math.gcd(tm, tk)
    n_pad = _round_up(n128, lcm)
    return n_pad, tm, tk


def _vmem_limit_bytes():
    """Generation-aware VMEM limit with headroom below the physical capacity."""
    cap = 64 * 1024 * 1024  # conservative fallback (v7x per-TC capacity)
    try:
        cap = int(pltpu.get_tpu_info().vmem_capacity_bytes)
    except Exception:
        pass
    return int(min(cap * 3 // 4, 100 * 1024 * 1024))


# ----------------------------------------------------------------------------
# Pallas kernels
# ----------------------------------------------------------------------------
def _feature_transform_kernel(x_ref, w_ref, o_ref):
    """M = X @ W for the very first block when it runs in pre-W order."""
    o_ref[...] = jnp.dot(
        x_ref[...], w_ref[...], preferred_element_type=jnp.float32
    ).astype(o_ref.dtype)


def _make_block_kernel(apply_w, emit_next):
    """GCN block: acc = A_hat @ M (k-tiled, zero tiles skipped), epilogue BN(eval) + ReLU.

    apply_w   : M holds raw features X; the epilogue multiplies by W (post-W matmul order).
                Otherwise M already holds X @ W (pre-W order).
    emit_next : emit h_relu @ W_next (the next block's pre-W operand) instead of h_relu,
                fusing the next feature transform into this epilogue (no HBM round trip).
    """

    def kernel(kstart_ref, kcount_ref, a_ref, m_ref, *rest):
        idx = 0
        if apply_w:
            w_ref = rest[idx]
            idx += 1
        scale_ref = rest[idx]
        idx += 1
        shift_ref = rest[idx]
        idx += 1
        if emit_next:
            w_next_ref = rest[idx]
            idx += 1
        out_ref = rest[idx]
        idx += 1
        acc_ref = rest[idx]

        i = pl.program_id(0)
        k = pl.program_id(1)

        @pl.when(k == 0)
        def _():
            acc_ref[...] = jnp.zeros_like(acc_ref)

        @pl.when(k < kcount_ref[i])
        def _():
            acc_ref[...] += jnp.dot(
                a_ref[...], m_ref[...], preferred_element_type=jnp.float32
            )

        @pl.when(k == pl.num_programs(1) - 1)
        def _():
            h = acc_ref[...]
            if apply_w:
                h = jnp.dot(
                    h.astype(jnp.bfloat16), w_ref[...],
                    preferred_element_type=jnp.float32,
                )
            h = jnp.maximum(h * scale_ref[...] + shift_ref[...], 0.0)
            if emit_next:
                out_ref[...] = jnp.dot(
                    h.astype(jnp.bfloat16), w_next_ref[...],
                    preferred_element_type=jnp.float32,
                ).astype(out_ref.dtype)
            else:
                out_ref[...] = h.astype(out_ref.dtype)

    return kernel


def _pool_linear_kernel(p_ref, h_ref, invc_ref, w_ref, b_ref, o_ref, acc_ref):
    """global_mean_pool (one-hot matmul tiled over nodes, f32 accumulator) + final Linear.
    Dropout(p=0.5) is identity in eval mode."""
    k = pl.program_id(0)

    @pl.when(k == 0)
    def _():
        acc_ref[...] = jnp.zeros_like(acc_ref)

    acc_ref[...] += jnp.dot(p_ref[...], h_ref[...], preferred_element_type=jnp.float32)

    @pl.when(k == pl.num_programs(0) - 1)
    def _():
        pooled = acc_ref[...] * invc_ref[...]
        o_ref[...] = (
            jnp.dot(pooled.astype(jnp.bfloat16), w_ref[...],
                    preferred_element_type=jnp.float32)
            + b_ref[...]
        )


# ----------------------------------------------------------------------------
# pallas_call wrappers
# ----------------------------------------------------------------------------
def _run_feature_transform(x_bf16, w, tm, vmem_limit):
    n_pad, c_in = x_bf16.shape
    c_out = w.shape[1]
    return pl.pallas_call(
        _feature_transform_kernel,
        out_shape=jax.ShapeDtypeStruct((n_pad, c_out), jnp.bfloat16),
        grid_spec=pltpu.PrefetchScalarGridSpec(
            num_scalar_prefetch=0,
            grid=(n_pad // tm,),
            in_specs=[
                pl.BlockSpec((tm, c_in), lambda i: (i, 0)),
                pl.BlockSpec((c_in, c_out), lambda i: (0, 0)),
            ],
            out_specs=pl.BlockSpec((tm, c_out), lambda i: (i, 0)),
        ),
        compiler_params=pltpu.CompilerParams(
            dimension_semantics=("parallel",),
            vmem_limit_bytes=vmem_limit,
        ),
    )(x_bf16, w.astype(jnp.bfloat16))


def _run_block(a_bf16, m_bf16, scale, shift, kstart, kcount, k_steps, tm, tk,
               vmem_limit, w=None, w_next=None):
    n_pad = a_bf16.shape[0]
    c_m = m_bf16.shape[1]
    c_out = scale.shape[1]
    c_emit = w_next.shape[1] if w_next is not None else c_out
    n_rt = n_pad // tm
    apply_w = w is not None
    emit_next = w_next is not None

    def a_map(i, k, ks, kc):
        kk = ks[i] + jnp.minimum(k, jnp.maximum(kc[i] - 1, 0))
        return (i, kk)

    def m_map(i, k, ks, kc):
        kk = ks[i] + jnp.minimum(k, jnp.maximum(kc[i] - 1, 0))
        return (kk, 0)

    const = lambda i, k, ks, kc: (0, 0)

    in_specs = [
        pl.BlockSpec((tm, tk), a_map),       # A_hat tile (streamed; zero tiles skipped)
        pl.BlockSpec((tk, c_m), m_map),      # features / XW tile (streamed)
    ]
    operands = [a_bf16, m_bf16]
    if apply_w:
        in_specs.append(pl.BlockSpec((c_m, c_out), const))
        operands.append(w.astype(jnp.bfloat16))
    in_specs += [pl.BlockSpec((1, c_out), const), pl.BlockSpec((1, c_out), const)]
    operands += [scale, shift]
    if emit_next:
        in_specs.append(pl.BlockSpec((c_out, c_emit), const))
        operands.append(w_next.astype(jnp.bfloat16))

    flops = 2 * n_rt * tm * k_steps * tk * c_m
    if apply_w:
        flops += 2 * n_pad * c_m * c_out
    if emit_next:
        flops += 2 * n_pad * c_out * c_emit
    bytes_accessed = (
        n_rt * k_steps * tm * tk * 2          # A tiles actually streamed
        + n_rt * k_steps * tk * c_m * 2       # M re-streamed once per row strip
        + n_pad * c_emit * 2                  # output
        + c_out * 4 * 2                       # scale + shift
        + (c_m * c_out * 2 if apply_w else 0)
        + (c_out * c_emit * 2 if emit_next else 0)
    )
    cost = pl.CostEstimate(flops=int(flops), transcendentals=0,
                           bytes_accessed=int(bytes_accessed))

    return pl.pallas_call(
        _make_block_kernel(apply_w, emit_next),
        out_shape=jax.ShapeDtypeStruct((n_pad, c_emit), jnp.bfloat16),
        grid_spec=pltpu.PrefetchScalarGridSpec(
            num_scalar_prefetch=2,
            grid=(n_rt, k_steps),
            in_specs=in_specs,
            out_specs=pl.BlockSpec((tm, c_emit), lambda i, k, ks, kc: (i, 0)),
            scratch_shapes=[pltpu.VMEM((tm, c_m), jnp.float32)],
        ),
        compiler_params=pltpu.CompilerParams(
            dimension_semantics=("parallel", "arbitrary"),
            vmem_limit_bytes=vmem_limit,
        ),
        cost_estimate=cost,
    )(kstart, kcount, *operands)


def _run_pool_linear(pool_bf16, h_bf16, invc, lin_w, lin_b, tk, vmem_limit):
    g_pad, n_pad = pool_bf16.shape
    c = h_bf16.shape[1]
    k_pad = lin_w.shape[1]
    cost = pl.CostEstimate(
        flops=int(2 * g_pad * n_pad * c + 2 * g_pad * c * k_pad),
        transcendentals=0,
        bytes_accessed=int(pool_bf16.size * 2 + h_bf16.size * 2
                           + lin_w.size * 2 + g_pad * k_pad * 4),
    )
    return pl.pallas_call(
        _pool_linear_kernel,
        out_shape=jax.ShapeDtypeStruct((g_pad, k_pad), jnp.float32),
        grid_spec=pltpu.PrefetchScalarGridSpec(
            num_scalar_prefetch=0,
            grid=(n_pad // tk,),
            in_specs=[
                pl.BlockSpec((g_pad, tk), lambda k: (0, k)),
                pl.BlockSpec((tk, c), lambda k: (k, 0)),
                pl.BlockSpec((g_pad, 1), lambda k: (0, 0)),
                pl.BlockSpec((c, k_pad), lambda k: (0, 0)),
                pl.BlockSpec((1, k_pad), lambda k: (0, 0)),
            ],
            out_specs=pl.BlockSpec((g_pad, k_pad), lambda k: (0, 0)),
            scratch_shapes=[pltpu.VMEM((g_pad, c), jnp.float32)],
        ),
        compiler_params=pltpu.CompilerParams(
            dimension_semantics=("arbitrary",),
            vmem_limit_bytes=vmem_limit,
        ),
        cost_estimate=cost,
    )(pool_bf16, h_bf16, invc, lin_w.astype(jnp.bfloat16), lin_b)


# ----------------------------------------------------------------------------
# Host-side glue: normalized adjacency, sparsity schedule, pooling inputs
# ----------------------------------------------------------------------------
def normalized_adjacency(edge_index, edge_weight, num_nodes, n_pad):
    """Dense D^-1/2 (A + I) D^-1/2 with A[target, source] = edge_weight, built at padded size."""
    # TODO(synk): matches PyG symmetric gcn_norm for undirected edge lists; directed-graph
    # degree convention (PyG gathers degree at the column index) may differ.
    # TODO(synk): cache the bf16 cast of this across forward calls for static graphs.
    src, tgt = edge_index[0], edge_index[1]
    a = jnp.zeros((n_pad, n_pad), jnp.float32)
    a = a.at[tgt, src].add(edge_weight.astype(jnp.float32))
    diag = jnp.arange(num_nodes)
    a = a.at[diag, diag].add(1.0)                      # self loops (real nodes only)
    deg = a.sum(axis=1)
    dinv = jnp.where(deg > 0, jax.lax.rsqrt(deg), 0.0)
    return a * dinv[:, None] * dinv[None, :]


def _build_k_schedule(edge_index, num_nodes, n_pad, tm, tk):
    """Per-row-tile contiguous range of A_hat k-tiles that can be nonzero.

    Derived from the actual edge structure (+ self loops), so it is exact for PyG-style
    block-diagonal batches and still correct for arbitrary edge lists. Requires concrete
    (non-traced) edge_index — it runs on the host once per graph structure.
    """
    src = np.asarray(edge_index[0])
    tgt = np.asarray(edge_index[1])
    n_rt = n_pad // tm
    kstart = np.zeros((n_rt,), np.int32)
    kcount = np.zeros((n_rt,), np.int32)
    for i in range(n_rt):
        r0, r1 = i * tm, min((i + 1) * tm, num_nodes)
        if r0 >= num_nodes:
            continue                                   # padded-only strip: all-zero rows
        in_strip = (tgt >= r0) & (tgt < r1)
        cols = np.concatenate([src[in_strip], np.arange(r0, r1)])
        kstart[i] = int(cols.min()) // tk
        kcount[i] = int(cols.max()) // tk + 1 - kstart[i]
    k_steps = max(1, int(kcount.max()))
    return jnp.asarray(kstart), jnp.asarray(kcount), k_steps


def _pool_inputs(batch, num_graphs, num_nodes, n_pad):
    """One-hot pooling matrix (bf16, graph axis padded to 8) + per-graph 1/count (f32)."""
    g_pad = _round_up(max(num_graphs, 1), 8)
    batch_p = jnp.full((n_pad,), -1, jnp.int32).at[:num_nodes].set(batch.astype(jnp.int32))
    onehot = batch_p[None, :] == jnp.arange(g_pad, dtype=jnp.int32)[:, None]
    counts = onehot.sum(axis=1, keepdims=True).astype(jnp.float32)
    invc = jnp.where(counts > 0, 1.0 / counts, 0.0)
    return onehot.astype(jnp.bfloat16), invc


# ----------------------------------------------------------------------------
# Parameters (padded to 128-lane channel widths, conv bias folded into BN shift)
# ----------------------------------------------------------------------------
def init_params(key, num_features, hidden_channels, num_classes):
    dims = [num_features] + list(hidden_channels)
    eps = 1e-5
    blocks = []
    for i in range(len(dims) - 1):
        c_in, c_out = dims[i], dims[i + 1]
        c_in_p, c_out_p = _round_up(c_in, 128), _round_up(c_out, 128)
        key, k_w, k_b, k_g, k_be = jax.random.split(key, 5)
        w = jax.random.normal(k_w, (c_in, c_out), jnp.float32) * (1.0 / jnp.sqrt(c_in))
        b = jax.random.normal(k_b, (1, c_out), jnp.float32) * 0.01
        gamma = 1.0 + 0.1 * jax.random.normal(k_g, (1, c_out), jnp.float32)
        beta = 0.1 * jax.random.normal(k_be, (1, c_out), jnp.float32)
        running_mean = jnp.zeros((1, c_out), jnp.float32)
        running_var = jnp.ones((1, c_out), jnp.float32)
        scale = gamma / jnp.sqrt(running_var + eps)
        shift = beta + (b - running_mean) * scale  # GCNConv bias folded into BN shift (exact)
        w_p = jnp.zeros((c_in_p, c_out_p), jnp.float32).at[:c_in, :c_out].set(w)
        scale_p = jnp.zeros((1, c_out_p), jnp.float32).at[:, :c_out].set(scale)
        shift_p = jnp.zeros((1, c_out_p), jnp.float32).at[:, :c_out].set(shift)
        blocks.append({"w": w_p, "scale": scale_p, "shift": shift_p})

    c_last = dims[-1]
    c_last_p = _round_up(c_last, 128)
    k_pad = _round_up(num_classes, 128)
    key, k_lw, k_lb = jax.random.split(key, 3)
    lin_w = jax.random.normal(k_lw, (c_last, num_classes), jnp.float32) * (1.0 / jnp.sqrt(c_last))
    lin_b = jax.random.normal(k_lb, (1, num_classes), jnp.float32) * 0.01
    lin_w_p = jnp.zeros((c_last_p, k_pad), jnp.float32).at[:c_last, :num_classes].set(lin_w)
    lin_b_p = jnp.zeros((1, k_pad), jnp.float32).at[:, :num_classes].set(lin_b)

    return {"blocks": blocks, "lin_w": lin_w_p, "lin_b": lin_b_p, "num_classes": num_classes}


# ----------------------------------------------------------------------------
# Forward (Pallas) and a pure-JAX f32 reference
# ----------------------------------------------------------------------------
def base_graph_model_forward(params, x, edge_index, edge_weight, batch, num_graphs):
    n, c_in = x.shape
    n_pad, tm, tk = _pad_geometry(n)
    vmem_limit = _vmem_limit_bytes()

    a_bf16 = normalized_adjacency(edge_index, edge_weight, n, n_pad).astype(jnp.bfloat16)
    kstart, kcount, k_steps = _build_k_schedule(edge_index, n, n_pad, tm, tk)

    blocks = params["blocks"]
    # Matmul order per block: "pre" (M = X@W streamed; N^2 matmul runs at width c_out) when
    # padded c_out <= c_in, else "post" (M = X streamed; @W in the epilogue).
    modes = ["pre" if blk["w"].shape[1] <= blk["w"].shape[0] else "post" for blk in blocks]

    c_in_p0 = blocks[0]["w"].shape[0]
    h = jnp.zeros((n_pad, c_in_p0), jnp.float32).at[:n, :c_in].set(x).astype(jnp.bfloat16)

    # Streamed operand for the first block (later blocks get theirs fused into epilogues).
    m = _run_feature_transform(h, blocks[0]["w"], tm, vmem_limit) if modes[0] == "pre" else h

    for bi, blk in enumerate(blocks):
        next_is_pre = bi + 1 < len(blocks) and modes[bi + 1] == "pre"
        m = _run_block(
            a_bf16, m, blk["scale"], blk["shift"],
            kstart, kcount, k_steps, tm, tk, vmem_limit,
            w=blk["w"] if modes[bi] == "post" else None,
            w_next=blocks[bi + 1]["w"] if next_is_pre else None,
        )
        # `m` is now either the activations h (next block streams raw features) or
        # h @ W_next (next block's pre-W operand, fused into this block's epilogue).

    pool_bf16, invc = _pool_inputs(batch, num_graphs, n, n_pad)
    # TODO(synk): F.dropout(p=0.5) modeled in eval mode (identity); training RNG mask not applied.
    logits_pad = _run_pool_linear(pool_bf16, m, invc, params["lin_w"], params["lin_b"],
                                  tk, vmem_limit)
    return logits_pad[:num_graphs, : params["num_classes"]]


def reference_forward(params, x, edge_index, edge_weight, batch, num_graphs):
    n, c_in = x.shape
    n_pad, _, _ = _pad_geometry(n)
    a = normalized_adjacency(edge_index, edge_weight, n, n_pad)
    c0 = params["blocks"][0]["w"].shape[0]
    h = jnp.zeros((n_pad, c0), jnp.float32).at[:n, :c_in].set(x)
    for blk in params["blocks"]:
        h = jnp.maximum((a @ (h @ blk["w"])) * blk["scale"] + blk["shift"], 0.0)
    onehot = (batch[None, :] == jnp.arange(num_graphs)[:, None]).astype(jnp.float32)
    counts = jnp.maximum(onehot.sum(axis=1, keepdims=True), 1.0)
    pooled = (onehot @ h[:n]) / counts
    out = pooled @ params["lin_w"] + params["lin_b"]
    return out[:, : params["num_classes"]]


# ----------------------------------------------------------------------------
# Demo
# ----------------------------------------------------------------------------
if __name__ == "__main__":
    num_nodes = 16
    num_edges = 40
    num_features = 8
    hidden_channels = [32, 16]
    num_classes = 4
    num_graphs = 2

    key = jax.random.PRNGKey(0)
    key, kx, ks, kt, kw = jax.random.split(key, 5)

    x = jax.random.normal(kx, (num_nodes, num_features), jnp.float32)
    src = jax.random.randint(ks, (num_edges,), 0, num_nodes)
    tgt = jax.random.randint(kt, (num_edges,), 0, num_nodes)
    edge_index = jnp.stack([src, tgt], axis=0)  # (2, E)
    edge_weight = jax.random.uniform(kw, (num_edges,), jnp.float32, 0.1, 1.0)
    batch = jnp.concatenate(
        [
            jnp.zeros((num_nodes // 2,), jnp.int32),
            jnp.ones((num_nodes - num_nodes // 2,), jnp.int32),
        ]
    )  # node -> graph id

    params = init_params(jax.random.PRNGKey(42), num_features, hidden_channels, num_classes)

    out = base_graph_model_forward(params, x, edge_index, edge_weight, batch, num_graphs)
    out = jax.block_until_ready(out)

    assert out.shape == (num_graphs, num_classes)
    assert bool(jnp.all(jnp.isfinite(out)))

    ref = reference_forward(params, x, edge_index, edge_weight, batch, num_graphs)
    assert bool(jnp.allclose(out, ref, atol=0.15, rtol=0.15)), (out, ref)

    print("KERNEL_OK")
</pallas_src>

<mosaic_0001>
module attributes {stable_mosaic.version = 11 : i64} {
  func.func @_feature_transform_kernel(%arg0: i32, %arg1: memref<128x128xbf16, #tpu.memory_space<vmem>>, %arg2: memref<128x128xbf16, #tpu.memory_space<vmem>>, %arg3: memref<128x128xbf16, #tpu.memory_space<vmem>>) attributes {dimension_semantics = [#tpu.dimension_semantics<parallel>], iteration_bounds = array<i64: 1>, scalar_prefetch = 0 : i64, scratch_operands = 0 : i64, tpu.core_type = #tpu.core_type<tc>, window_params = [{transform_indices = @transform_0, window_bounds = array<i64: 128, 128>}, {pipeline_mode = #tpu.pipeline_mode<synchronous>, transform_indices = @transform_1, window_bounds = array<i64: 128, 128>}, {transform_indices = @transform_2, window_bounds = array<i64: 128, 128>}]} {
    %c0 = arith.constant 0 : index
    %c0_0 = arith.constant 0 : index
    %0 = vector.load %arg1[%c0, %c0_0] : memref<128x128xbf16, #tpu.memory_space<vmem>>, vector<128x128xbf16>
    %c0_1 = arith.constant 0 : index
    %c0_2 = arith.constant 0 : index
    %1 = vector.load %arg2[%c0_1, %c0_2] : memref<128x128xbf16, #tpu.memory_space<vmem>>, vector<128x128xbf16>
    %cst = arith.constant dense<0.000000e+00> : vector<128x128xf32>
    %2 = tpu.matmul %0, %1, %cst {dimension_numbers = #tpu.dot_dimension_numbers<[1], [0], [0], [1], [0, 0, 1, 1], [], []>} : vector<128x128xbf16>, vector<128x128xbf16>, vector<128x128xf32> -> vector<128x128xf32>
    %3 = arith.truncf %2 : vector<128x128xf32> to vector<128x128xbf16>
    %c0_3 = arith.constant 0 : index
    %c0_4 = arith.constant 0 : index
    %4 = vector.load %arg3[%c0_3, %c0_4] : memref<128x128xbf16, #tpu.memory_space<vmem>>, vector<128x128xbf16>
    tpu.vector_store %arg3[%c0_3, %c0_4], %3 {strides = array<i32>} : memref<128x128xbf16, #tpu.memory_space<vmem>>, vector<128x128xbf16>,
    return
  }
  func.func @transform_0(%arg0: i32) -> (i32, i32) {
    %c0_i32 = arith.constant 0 : i32
    %c0_i32_0 = arith.constant 0 : i32
    return %arg0, %c0_i32 : i32, i32
  }
  func.func @transform_1(%arg0: i32) -> (i32, i32) {
    %c0_i32 = arith.constant 0 : i32
    %c0_i32_0 = arith.constant 0 : i32
    %c0_i32_1 = arith.constant 0 : i32
    return %c0_i32, %c0_i32_0 : i32, i32
  }
  func.func @transform_2(%arg0: i32) -> (i32, i32) {
    %c0_i32 = arith.constant 0 : i32
    %c0_i32_0 = arith.constant 0 : i32
    return %arg0, %c0_i32 : i32, i32
  }
}

</mosaic_0001>

<bundles_post_ra>
// kernel: tpu_custom_call.1
= control target key start
LH: loop header
LB: loop body
LE: loop exit
PB: predicated region body
PF: predicated region fallthrough
CT: control target
= control target key end

     0   :  { %7 = vsyncpa [#allocation3], 0  ;;  %s648_s0 = inlined_call_operand.hbm [shape: bf16[128,128], index: 0, kind: input, shape index: {}]   ;;  %s649_s1 = inlined_call_operand.hbm [shape: bf16[128,128], index: 1, kind: input, shape index: {}]   ;;  %s650_s2 = inlined_call_operand.hbm [shape: bf16[128,128], index: 2, kind: output, shape index: {}]  }
   0x1   :  { %8 = vsyncpa [#allocation6], 0 }
   0x2   :  { %9 = vsyncpa [#allocation4], 0  ;;  %s610_s9 = smov [#allocation2]  }
   0x3   :  { %s15_s10 = sshll.u32 %s610_s9, 4  ;;  %s16_s10 = int_to_ptr.vmem [resolvable:$true] %s15_s10 }
   0x4   :  { %s552_s11 = scalar_lea.vmem %s16_s10, 1024  ;;  %p557_p1 = scmp.lt.s32.totalorder %s16_s10, %s16_s10 }
   0x5   :  { %p553_p0 = scmp.ne.s32.totalorder %s16_s10, %s552_s11  ;;  %p558_p2 = scmp.lt.s32.totalorder %s552_s11, %s552_s11 }
   0x7   :  { %p559_p3 = por %p558_p2, %p557_p1 }
   0x9   :  { %p560_p4 = pnand %p559_p3, %p553_p0 }
   0xb   :  { %563 = shalt.err (!%p560_p4)
}
   0xc   :  { %s611_s12 = smov 64   ;;  %s612_s13 = smov 4  }
   0xd   :  { %21 = dma.hbm_to_vmem [thread:$0]  %s648_s0, 1024, %s16_s10, [#allocation3], %s611_s12, %s611_s12, %s612_s13  }
   0xe   :  { %s613_s16 = smov [#allocation5]  }
   0xf   :  { %s27_s17 = sshll.u32 %s613_s16, 4  ;;  %s28_s17 = int_to_ptr.vmem [resolvable:$true] %s27_s17 }
  0x10   :  { %s572_s18 = scalar_lea.vmem %s28_s17, 1024  ;;  %p577_p6 = scmp.lt.s32.totalorder %s28_s17, %s28_s17 }
  0x11   :  { %p573_p5 = scmp.ne.s32.totalorder %s28_s17, %s572_s18  ;;  %p578_p7 = scmp.lt.s32.totalorder %s572_s18, %s572_s18 }
  0x13   :  { %p579_p8 = por %p578_p7, %p577_p6 }
  0x15   :  { %p580_p9 = pnand %p579_p8, %p573_p5 }
  0x17   :  { %583 = shalt.err (!%p580_p9)
}
  0x18   :  { %33 = dma.hbm_to_vmem [thread:$0]  %s649_s1, 1024, %s28_s17, [#allocation6], %s611_s12, %s611_s12, %s612_s13  }
  0x19   :  { %604 = dma.done.wait [#allocation3], 1024  }
  0x1a   :  { %605 = vsyncadd [#allocation3], 4294966272 }
  0x1b   :  { %606 = dma.done.wait [#allocation6], 1024  }
  0x1c   :  { %607 = vsyncadd [#allocation6], 4294966272  ;;  %v528_v0 = vld [vmem:[#allocation5 + $0x38] sm:$0xff]   ;;  %v529_v1 = vld [vmem:[#allocation5 + $0x30] sm:$0xff]   ;;  %s614_s0 = smov [#allocation7]  }
  0x1d   :  { %475 = vmatprep.subr.bf16.mxu0 %v528_v0  ;;  %507 = vmatprep.subr.bf16.mxu1 %v528_v0  ;;  %v530_v2 = vld [vmem:[#allocation5 + $0x28] sm:$0xff]   ;;  %v531_v3 = vld [vmem:[#allocation5 + $0x20] sm:$0xff]   ;;  %v532_v6 = vld [vmem:[#allocation5 + $0x18] sm:$0xff]   ;;  %s351_s1 = sshll.u32 %s614_s0, 4  ;;  %s352_s1 = int_to_ptr.vmem [resolvable:$true] %s351_s1 }
  0x1e   :  { %476 = vmatpush3.bf16.msra.mxu0 %v528_v0  ;;  %515 = vmatpush3.bf16.msra.mxu1 %v528_v0  ;;  %v536_v4 = vld [vmem:[#allocation2] sm:$0xff]   ;;  %v533_v7 = vld [vmem:[#allocation5 + $0x10] sm:$0xff]   ;;  %v534_v8 = vld [vmem:[#allocation5 + $0x8] sm:$0xff]   ;;  %s584_s21 = scalar_lea.vmem %s352_s1, 1024  ;;  %p589_p11 = scmp.lt.s32.totalorder %s352_s1, %s352_s1 }
  0x1f   :  { %477 = vmatprep.subr.bf16.mxu0 %v529_v1  ;;  %508 = vmatprep.subr.bf16.mxu1 %v529_v1  ;;  %v537_v5 = vld [vmem:[#allocation2 + $0x20] sm:$0xff]   ;;  %v538_v10 = vld [vmem:[#allocation2 + $0x8] sm:$0xff]   ;;  %v540_v12 = vld [vmem:[#allocation2 + $0x10] sm:$0xff]   ;;  %p585_p10 = scmp.ne.s32.totalorder %s352_s1, %s584_s21  ;;  %p590_p12 = scmp.lt.s32.totalorder %s584_s21, %s584_s21 }
  0x20   :  { %491 = vmatprep.mubr.bf16.mxu0 %v536_v4  ;;  %499 = vmatprep.mubr.bf16.mxu1 %v537_v5  ;;  %v535_v9 = vld [vmem:[#allocation5] sm:$0xff]   ;;  %v539_v11 = vld [vmem:[#allocation2 + $0x28] sm:$0xff]   ;;  %v541_v13 = vld [vmem:[#allocation2 + $0x30] sm:$0xff]  }
  0x21   :  { %v542_v14 = vld [vmem:[#allocation2 + $0x18] sm:$0xff]   ;;  %p591_p13 = por %p590_p12, %p589_p11 }
  0x22   :  { %478 = vmatpush3.bf16.msra.mxu0 %v529_v1  ;;  %516 = vmatpush3.bf16.msra.mxu1 %v529_v1  ;;  %v543_v15 = vld [vmem:[#allocation2 + $0x38] sm:$0xff]  }
  0x23   :  { %479 = vmatprep.subr.bf16.mxu0 %v530_v2  ;;  %509 = vmatprep.subr.bf16.mxu1 %v530_v2  ;;  %p592_p0 = pnand %p591_p13, %p585_p10 }
  0x26   :  { %480 = vmatpush3.bf16.msra.mxu0 %v530_v2  ;;  %517 = vmatpush3.bf16.msra.mxu1 %v530_v2 }
  0x27   :  { %481 = vmatprep.subr.bf16.mxu0 %v531_v3  ;;  %510 = vmatprep.subr.bf16.mxu1 %v531_v3 }
  0x2a   :  { %482 = vmatpush3.bf16.msra.mxu0 %v531_v3  ;;  %518 = vmatpush3.bf16.msra.mxu1 %v531_v3 }
  0x2b   :  { %483 = vmatprep.subr.bf16.mxu0 %v532_v6  ;;  %511 = vmatprep.subr.bf16.mxu1 %v532_v6 }
  0x2e   :  { %484 = vmatpush3.bf16.msra.mxu0 %v532_v6  ;;  %519 = vmatpush3.bf16.msra.mxu1 %v532_v6 }
  0x2f   :  { %485 = vmatprep.subr.bf16.mxu0 %v533_v7  ;;  %512 = vmatprep.subr.bf16.mxu1 %v533_v7 }
  0x32   :  { %486 = vmatpush3.bf16.msra.mxu0 %v533_v7  ;;  %520 = vmatpush3.bf16.msra.mxu1 %v533_v7 }
  0x33   :  { %487 = vmatprep.subr.bf16.mxu0 %v534_v8  ;;  %513 = vmatprep.subr.bf16.mxu1 %v534_v8 }
  0x36   :  { %488 = vmatpush3.bf16.msra.mxu0 %v534_v8  ;;  %521 = vmatpush3.bf16.msra.mxu1 %v534_v8 }
  0x37   :  { %489 = vmatprep.subr.bf16.mxu0 %v535_v9  ;;  %514 = vmatprep.subr.bf16.mxu1 %v535_v9 }
  0x3a   :  { %490 = vmatpush3.bf16.msra.mxu0 %v535_v9  ;;  %522 = vmatpush3.bf16.msra.mxu1 %v535_v9 }
  0x3d   :  { %492 = vmatmul.mubr.bf16.vlgmr.msra.gmra.mxu0 %v538_v10  ;;  %500 = vmatmul.mubr.bf16.vlgmr.msra.gmra.mxu1 %v539_v11 }
  0x3e   :  { %495 = vmatprep.mubr.bf16.mxu0 %v540_v12  ;;  %503 = vmatprep.mubr.bf16.mxu1 %v541_v13 }
  0x45   :  { %496 = vmatmul.mubr.bf16.gmra.mxu0 %v542_v14  ;;  %504 = vmatmul.mubr.bf16.gmra.mxu1 %v543_v15 }
  0xfd   :  { %v493_v16 = vpop.f32.mrf.mxu0  ;;  %v501_v17 = vpop.f32.mrf.mxu1 }
  0xff   :  { %v203_v18 = vpop.f32.mrf.mxu0  ;;  %v235_v19 = vpop.f32.mrf.mxu1 }
 0x101   :  { %v494_v20 = vpop.f32.mrf.mxu0  ;;  %v502_v21 = vpop.f32.mrf.mxu1 }
 0x102   :  { %v420_v22 = vpack.c.bf16 %v494_v20, %v493_v16  ;;  %v440_v23 = vpack.c.bf16 %v502_v21, %v501_v17 }
 0x103   :  { %v206_v24 = vpop.f32.mrf.mxu0  ;;  %v238_v25 = vpop.f32.mrf.mxu1 }
 0x104   :  { %452 = vst [vmem:[#allocation7 + $0x8] sm:$0xff] %v420_v22   ;;  %456 = vst [vmem:[#allocation7 + $0x28] sm:$0xff] %v440_v23   ;;  %v415_v26 = vpack.c.bf16 %v206_v24, %v203_v18  ;;  %v435_v27 = vpack.c.bf16 %v238_v25, %v235_v19 }
 0x105   :  { %v497_v28 = vpop.f32.mrf.mxu0  ;;  %v505_v29 = vpop.f32.mrf.mxu1 }
 0x106   :  { %416 = vst [vmem:[#allocation7] sm:$0xff] %v415_v26   ;;  %455 = vst [vmem:[#allocation7 + $0x20] sm:$0xff] %v435_v27  }
 0x107   :  { %v219_v30 = vpop.f32.mrf.mxu0  ;;  %v251_v31 = vpop.f32.mrf.mxu1 }
 0x109   :  { %v498_v32 = vpop.f32.mrf.mxu0  ;;  %v506_v33 = vpop.f32.mrf.mxu1 }
 0x10a   :  { %v430_v34 = vpack.c.bf16 %v498_v32, %v497_v28  ;;  %v450_v35 = vpack.c.bf16 %v506_v33, %v505_v29 }
 0x10b   :  { %v222_v36 = vpop.f32.mrf.mxu0  ;;  %v254_v37 = vpop.f32.mrf.mxu1 }
 0x10c   :  { %454 = vst [vmem:[#allocation7 + $0x18] sm:$0xff] %v430_v34   ;;  %458 = vst [vmem:[#allocation7 + $0x38] sm:$0xff] %v450_v35   ;;  %v425_v38 = vpack.c.bf16 %v222_v36, %v219_v30  ;;  %v445_v39 = vpack.c.bf16 %v254_v37, %v251_v31 }
 0x10e   :  { %453 = vst [vmem:[#allocation7 + $0x10] sm:$0xff] %v425_v38   ;;  %457 = vst [vmem:[#allocation7 + $0x30] sm:$0xff] %v445_v39  }
 0x10f   :  { %595 = shalt.err (!%p592_p0)
}
 0x110   :  { %357 = dma.vmem_to_hbm [thread:$0]  %s352_s1, 1024, %s650_s2, [#allocation4], %s611_s12, %s611_s12, %s612_s13  }
 0x111   :  { %608 = dma.done.wait [#allocation4], 1024  }
 0x112   :  { %609 = vsyncadd [#allocation4], 4294966272 }
 0x113   :  { %361 = vsyncpa [#allocation3], 1 }
 0x114   :  { %362 = vsyncpa [#allocation6], 1 }
 0x115   :  { %363 = vsyncpa [#allocation4], 1 }

</bundles_post_ra>
